<compile_context>
chip_gen: v7x
topology: tpu7x:2x2x1
jax: 0.10.0
libtpu: 0.0.40
codegen_flags: <defaults>
</compile_context>

<pallas_src>
import functools

import jax
import jax.numpy as jnp
from jax.experimental import pallas as pl
from jax.experimental.pallas import tpu as pltpu


def _round_up(v: int, m: int) -> int:
    return (v + m - 1) // m * m


# Keep all resident weights well under v7x's 64 MiB per-core VMEM.
_WEIGHT_VMEM_BUDGET = 16 * 1024 * 1024


# ---------------------------------------------------------------------------
# Fused multi-layer kernel
# ---------------------------------------------------------------------------
def _mlp_kernel(*refs, num_layers: int):
    """Fused MLP over one [tm, input_dim] row-tile.

    refs layout:
      refs[0]                       x_ref   [tm, input_dim]   (f32)
      refs[1 + 2*l], refs[2 + 2*l]  w_l [K, N] bf16, b_l [1, N] f32 (resident)
      refs[1 + 2*L]                 o_ref   [tm, output_dim]  (f32)
      refs[2 + 2*L], refs[3 + 2*L]  ping-pong VMEM scratch [tm, max_pad] bf16
    """
    o_ref = refs[1 + 2 * num_layers]
    scr = (refs[2 + 2 * num_layers], refs[3 + 2 * num_layers])

    for l in range(num_layers):
        w_ref = refs[1 + 2 * l]
        b_ref = refs[2 + 2 * l]
        k, n = w_ref.shape                         # static

        if l == 0:
            x = refs[0][...].astype(w_ref.dtype)   # cast tile to bf16 for MXU
        else:
            x = scr[(l + 1) % 2][:, :k]            # previous layer (bf16)

        # bf16 x bf16 -> f32 accumulation on the MXU.
        y = jnp.dot(x, w_ref[...], preferred_element_type=jnp.float32)
        y = y + b_ref[...]                         # bias add in f32

        if l < num_layers - 1:
            y = jnp.maximum(y, 0.0)                # ReLU (hidden layers only)
            scr[l % 2][:, :n] = y.astype(scr[0].dtype)   # stays in VMEM
        else:
            o_ref[...] = y.astype(o_ref.dtype)     # true-width final store


# ---------------------------------------------------------------------------
# Param handling
# ---------------------------------------------------------------------------
def init_mlp_params(key, input_dim, hidden_dim, output_dim, num_layers):
    """Deterministic init matching nn.Linear shapes: W [out, in], b [out]."""
    h = [hidden_dim] * (num_layers - 1)
    dims_in = [input_dim] + h
    dims_out = h + [output_dim]
    params = []
    for n_in, n_out in zip(dims_in, dims_out):
        key, kw, kb = jax.random.split(key, 3)
        bound = 1.0 / jnp.sqrt(jnp.float32(n_in))
        W = jax.random.uniform(kw, (n_out, n_in), jnp.float32, -bound, bound)
        b = jax.random.uniform(kb, (n_out,), jnp.float32, -bound, bound)
        params.append((W, b))
    return params


def prepare_mlp_params(params, compute_dtype=jnp.bfloat16):
    """One-time (cold path): transpose W -> [K, N], cast to bf16, and zero-pad
    only the *internal* feature dims to multiples of 128 so the VMEM scratch
    and MXU tiles are lane-dense.  Layer-0 K stays at the true input_dim and
    the last layer's N stays at the true output_dim (no HBM amplification).
    Zero-padded rows/cols stay exactly zero through dot/bias/ReLU."""
    num_layers = len(params)
    layers = []
    prev_n = None
    for l, (W, b) in enumerate(params):
        n_out, n_in = W.shape
        k_dim = n_in if l == 0 else prev_n                     # match producer
        n_dim = n_out if l == num_layers - 1 else _round_up(n_out, 128)
        w_t = jnp.zeros((k_dim, n_dim), compute_dtype)
        w_t = w_t.at[:n_in, :n_out].set(W.T.astype(compute_dtype))
        b_p = jnp.zeros((1, n_dim), jnp.float32).at[0, :n_out].set(
            b.astype(jnp.float32))
        layers.append((w_t, b_p))
        prev_n = n_dim
    input_dim = params[0][0].shape[1]
    output_dim = params[-1][0].shape[0]
    return layers, input_dim, output_dim


# ---------------------------------------------------------------------------
# Forward
# ---------------------------------------------------------------------------
def _xla_fallback(x2d, layers, num_layers):
    """Plain XLA path for models whose weights do not fit resident in VMEM."""
    y = x2d
    for i, (w, b) in enumerate(layers):
        y = jnp.dot(y.astype(w.dtype), w, preferred_element_type=jnp.float32)
        y = y + b
        if i < num_layers - 1:
            y = jnp.maximum(y, 0.0)
    return y


def mlp_forward(x, prepared):
    """x: [..., input_dim] -> [..., output_dim] via one fused Pallas kernel."""
    layers, input_dim, output_dim = prepared
    num_layers = len(layers)

    lead_shape = x.shape[:-1]
    x2d = x.reshape(-1, input_dim)
    M = x2d.shape[0]

    weight_bytes = sum(w.size * w.dtype.itemsize + b.size * b.dtype.itemsize
                       for w, b in layers)
    if weight_bytes > _WEIGHT_VMEM_BUDGET:
        # TODO(synk): grid-tile the largest layer's K/N instead of keeping all
        # weights resident; for now fall back to plain XLA rather than spill.
        out = _xla_fallback(x2d, layers, num_layers)
        return out.reshape(*lead_shape, output_dim)

    # Row tile: smallest candidate covering M (minimizes ragged overcompute),
    # multiple of 16 for bf16 sublane packing, capped at 512 (HBM roofline).
    tm = 512
    for cand in (16, 32, 64, 128, 256, 512):
        if cand >= M:
            tm = cand
            break
    grid_m = pl.cdiv(M, tm)          # ragged last block, no M pre-pad

    hidden_pads = [w.shape[1] for w, _ in layers[:-1]]
    max_pad = max(max(hidden_pads, default=128), 128)

    # VMEM budget: resident weights (x2 covers the non-resident fallback),
    # double-buffered activation in/out tiles, bf16 ping-pong scratch.
    est = (2 * weight_bytes
           + 2 * tm * input_dim * x2d.dtype.itemsize
           + 2 * tm * output_dim * x2d.dtype.itemsize
           + 2 * tm * max_pad * 2)
    vmem_limit = int(min(64 * 1024 * 1024,
                         max(16 * 1024 * 1024, est * 3 // 2)))

    flops = 2 * M * sum(w.shape[0] * w.shape[1] for w, _ in layers)
    bytes_accessed = (x2d.size * x2d.dtype.itemsize
                      + weight_bytes
                      + M * output_dim * x2d.dtype.itemsize)

    kernel = functools.partial(_mlp_kernel, num_layers=num_layers)

    def build_call(resident_mode):
        # Activations/output tiled over the grid; weights/biases resident
        # with constant index maps (single-buffered when supported).
        in_specs = [pl.BlockSpec((tm, input_dim), lambda i: (i, 0))]
        for w_t, b_p in layers:
            kp, np_ = w_t.shape
            in_specs.append(pl.BlockSpec((kp, np_), lambda i: (0, 0),
                                         pipeline_mode=resident_mode))
            in_specs.append(pl.BlockSpec((1, np_), lambda i: (0, 0),
                                         pipeline_mode=resident_mode))
        out_spec = pl.BlockSpec((tm, output_dim), lambda i: (i, 0))
        return pl.pallas_call(
            kernel,
            out_shape=jax.ShapeDtypeStruct((M, output_dim), x.dtype),
            grid_spec=pltpu.PrefetchScalarGridSpec(
                num_scalar_prefetch=0,
                grid=(grid_m,),
                in_specs=in_specs,
                out_specs=out_spec,
                scratch_shapes=[
                    pltpu.VMEM((tm, max_pad), jnp.bfloat16),
                    pltpu.VMEM((tm, max_pad), jnp.bfloat16),
                ],
            ),
            compiler_params=pltpu.CompilerParams(
                dimension_semantics=("parallel",),
                vmem_limit_bytes=vmem_limit,
            ),
            cost_estimate=pl.CostEstimate(
                flops=flops, transcendentals=0, bytes_accessed=bytes_accessed),
        )

    flat_args = [x2d]
    for w_t, b_p in layers:
        flat_args.extend([w_t, b_p])

    try:
        # Invariant weights: single buffer (constant index_map => safe).
        out = build_call(pl.Buffered(1))(*flat_args)
    except Exception:
        # Compatibility fallback for JAX builds without per-operand
        # pipeline_mode support — default double-buffering, same semantics.
        out = build_call(None)(*flat_args)

    return out.reshape(*lead_shape, output_dim)


def mlp_forward_ref(x, params):
    """Pure-JAX f32 reference of the PyTorch forward."""
    num_layers = len(params)
    for i, (W, b) in enumerate(params):
        x = x @ W.T + b
        if i < num_layers - 1:
            x = jax.nn.relu(x)
    return x


if __name__ == "__main__":
    key = jax.random.PRNGKey(0)
    # Small shapes consistent with the module: batch=2, seq=8, input_dim=32,
    # hidden_dim=64, output_dim=16, num_layers=3.
    batch, seq = 2, 8
    input_dim, hidden_dim, output_dim, num_layers = 32, 64, 16, 3

    key, kx = jax.random.split(key)
    x = jax.random.normal(kx, (batch, seq, input_dim), jnp.float32)

    params = init_mlp_params(key, input_dim, hidden_dim, output_dim, num_layers)
    prepared = prepare_mlp_params(params)   # transpose + bf16 + pad once (cold)

    out = mlp_forward(x, prepared)
    out = jax.block_until_ready(out)

    ref = mlp_forward_ref(x, params)
    assert out.shape == (batch, seq, output_dim)
    # bf16 weights/activations with f32 accumulation: ~1e-2 relative vs f32 ref.
    assert jnp.allclose(out, ref, atol=5e-2, rtol=5e-2), (
        float(jnp.max(jnp.abs(out - ref))))

    print("KERNEL_OK")
</pallas_src>

<mosaic_0001>
module attributes {stable_mosaic.version = 11 : i64} {
  func.func @_mlp_kernel(%arg0: i32, %arg1: memref<16x32xf32, #tpu.memory_space<vmem>>, %arg2: memref<32x128xbf16, #tpu.memory_space<vmem>>, %arg3: memref<1x128xf32, #tpu.memory_space<vmem>>, %arg4: memref<128x128xbf16, #tpu.memory_space<vmem>>, %arg5: memref<1x128xf32, #tpu.memory_space<vmem>>, %arg6: memref<128x16xbf16, #tpu.memory_space<vmem>>, %arg7: memref<1x16xf32, #tpu.memory_space<vmem>>, %arg8: memref<16x16xf32, #tpu.memory_space<vmem>>, %arg9: memref<16x128xbf16, #tpu.memory_space<vmem>>, %arg10: memref<16x128xbf16, #tpu.memory_space<vmem>>) attributes {dimension_semantics = [#tpu.dimension_semantics<parallel>], iteration_bounds = array<i64: 1>, scalar_prefetch = 0 : i64, scratch_operands = 2 : i64, tpu.core_type = #tpu.core_type<tc>, window_params = [{transform_indices = @transform_0, window_bounds = array<i64: 16, 32>}, {pipeline_mode = #tpu.pipeline_mode<synchronous>, transform_indices = @transform_1, window_bounds = array<i64: 32, 128>}, {pipeline_mode = #tpu.pipeline_mode<synchronous>, transform_indices = @transform_2, window_bounds = array<i64: 1, 128>}, {pipeline_mode = #tpu.pipeline_mode<synchronous>, transform_indices = @transform_3, window_bounds = array<i64: 128, 128>}, {pipeline_mode = #tpu.pipeline_mode<synchronous>, transform_indices = @transform_4, window_bounds = array<i64: 1, 128>}, {pipeline_mode = #tpu.pipeline_mode<synchronous>, transform_indices = @transform_5, window_bounds = array<i64: 128, 16>}, {pipeline_mode = #tpu.pipeline_mode<synchronous>, transform_indices = @transform_6, window_bounds = array<i64: 1, 16>}, {transform_indices = @transform_7, window_bounds = array<i64: 16, 16>}]} {
    %c0 = arith.constant 0 : index
    %c0_0 = arith.constant 0 : index
    %0 = vector.load %arg1[%c0, %c0_0] : memref<16x32xf32, #tpu.memory_space<vmem>>, vector<16x32xf32>
    %1 = arith.truncf %0 : vector<16x32xf32> to vector<16x32xbf16>
    %c0_1 = arith.constant 0 : index
    %c0_2 = arith.constant 0 : index
    %2 = vector.load %arg2[%c0_1, %c0_2] : memref<32x128xbf16, #tpu.memory_space<vmem>>, vector<32x128xbf16>
    %cst = arith.constant dense<0.000000e+00> : vector<16x128xf32>
    %3 = tpu.matmul %1, %2, %cst {dimension_numbers = #tpu.dot_dimension_numbers<[1], [0], [0], [1], [0, 0, 1, 1], [], []>} : vector<16x32xbf16>, vector<32x128xbf16>, vector<16x128xf32> -> vector<16x128xf32>
    %c0_3 = arith.constant 0 : index
    %c0_4 = arith.constant 0 : index
    %4 = vector.load %arg3[%c0_3, %c0_4] : memref<1x128xf32, #tpu.memory_space<vmem>>, vector<1x128xf32>
    %5 = vector.broadcast %4 : vector<1x128xf32> to vector<16x128xf32>
    %6 = arith.addf %3, %5 : vector<16x128xf32>
    %cst_5 = arith.constant 0.000000e+00 : f32
    %7 = vector.broadcast %cst_5 : f32 to vector<16x128xf32>
    %8 = arith.maximumf %6, %7 : vector<16x128xf32>
    %9 = arith.truncf %8 : vector<16x128xf32> to vector<16x128xbf16>
    %c0_6 = arith.constant 0 : index
    %c0_7 = arith.constant 0 : index
    %10 = vector.load %arg9[%c0_6, %c0_7] : memref<16x128xbf16, #tpu.memory_space<vmem>>, vector<16x128xbf16>
    tpu.vector_store %arg9[%c0_6, %c0_7], %9 {strides = array<i32>} : memref<16x128xbf16, #tpu.memory_space<vmem>>, vector<16x128xbf16>,
    %c0_8 = arith.constant 0 : index
    %c0_9 = arith.constant 0 : index
    %11 = vector.load %arg9[%c0_8, %c0_9] : memref<16x128xbf16, #tpu.memory_space<vmem>>, vector<16x128xbf16>
    %c0_10 = arith.constant 0 : index
    %c0_11 = arith.constant 0 : index
    %12 = vector.load %arg4[%c0_10, %c0_11] : memref<128x128xbf16, #tpu.memory_space<vmem>>, vector<128x128xbf16>
    %cst_12 = arith.constant dense<0.000000e+00> : vector<16x128xf32>
    %13 = tpu.matmul %11, %12, %cst_12 {dimension_numbers = #tpu.dot_dimension_numbers<[1], [0], [0], [1], [0, 0, 1, 1], [], []>} : vector<16x128xbf16>, vector<128x128xbf16>, vector<16x128xf32> -> vector<16x128xf32>
    %c0_13 = arith.constant 0 : index
    %c0_14 = arith.constant 0 : index
    %14 = vector.load %arg5[%c0_13, %c0_14] : memref<1x128xf32, #tpu.memory_space<vmem>>, vector<1x128xf32>
    %15 = vector.broadcast %14 : vector<1x128xf32> to vector<16x128xf32>
    %16 = arith.addf %13, %15 : vector<16x128xf32>
    %cst_15 = arith.constant 0.000000e+00 : f32
    %17 = vector.broadcast %cst_15 : f32 to vector<16x128xf32>
    %18 = arith.maximumf %16, %17 : vector<16x128xf32>
    %19 = arith.truncf %18 : vector<16x128xf32> to vector<16x128xbf16>
    %c0_16 = arith.constant 0 : index
    %c0_17 = arith.constant 0 : index
    %20 = vector.load %arg10[%c0_16, %c0_17] : memref<16x128xbf16, #tpu.memory_space<vmem>>, vector<16x128xbf16>
    tpu.vector_store %arg10[%c0_16, %c0_17], %19 {strides = array<i32>} : memref<16x128xbf16, #tpu.memory_space<vmem>>, vector<16x128xbf16>,
    %c0_18 = arith.constant 0 : index
    %c0_19 = arith.constant 0 : index
    %21 = vector.load %arg10[%c0_18, %c0_19] : memref<16x128xbf16, #tpu.memory_space<vmem>>, vector<16x128xbf16>
    %c0_20 = arith.constant 0 : index
    %c0_21 = arith.constant 0 : index
    %22 = vector.load %arg6[%c0_20, %c0_21] : memref<128x16xbf16, #tpu.memory_space<vmem>>, vector<128x16xbf16>
    %cst_22 = arith.constant dense<0.000000e+00> : vector<16x16xf32>
    %23 = tpu.matmul %21, %22, %cst_22 {dimension_numbers = #tpu.dot_dimension_numbers<[1], [0], [0], [1], [0, 0, 1, 1], [], []>} : vector<16x128xbf16>, vector<128x16xbf16>, vector<16x16xf32> -> vector<16x16xf32>
    %c0_23 = arith.constant 0 : index
    %c0_24 = arith.constant 0 : index
    %24 = vector.load %arg7[%c0_23, %c0_24] : memref<1x16xf32, #tpu.memory_space<vmem>>, vector<1x16xf32>
    %25 = vector.broadcast %24 : vector<1x16xf32> to vector<16x16xf32>
    %26 = arith.addf %23, %25 : vector<16x16xf32>
    %c0_25 = arith.constant 0 : index
    %c0_26 = arith.constant 0 : index
    %27 = vector.load %arg8[%c0_25, %c0_26] : memref<16x16xf32, #tpu.memory_space<vmem>>, vector<16x16xf32>
    tpu.vector_store %arg8[%c0_25, %c0_26], %26 {strides = array<i32>} : memref<16x16xf32, #tpu.memory_space<vmem>>, vector<16x16xf32>,
    return
  }
  func.func @transform_0(%arg0: i32) -> (i32, i32) {
    %c0_i32 = arith.constant 0 : i32
    %c0_i32_0 = arith.constant 0 : i32
    return %arg0, %c0_i32 : i32, i32
  }
  func.func @transform_1(%arg0: i32) -> (i32, i32) {
    %c0_i32 = arith.constant 0 : i32
    %c0_i32_0 = arith.constant 0 : i32
    %c0_i32_1 = arith.constant 0 : i32
    return %c0_i32, %c0_i32_0 : i32, i32
  }
  func.func @transform_2(%arg0: i32) -> (i32, i32) {
    %c0_i32 = arith.constant 0 : i32
    %c0_i32_0 = arith.constant 0 : i32
    %c0_i32_1 = arith.constant 0 : i32
    return %c0_i32, %c0_i32_0 : i32, i32
  }
  func.func @transform_3(%arg0: i32) -> (i32, i32) {
    %c0_i32 = arith.constant 0 : i32
    %c0_i32_0 = arith.constant 0 : i32
    %c0_i32_1 = arith.constant 0 : i32
    return %c0_i32, %c0_i32_0 : i32, i32
  }
  func.func @transform_4(%arg0: i32) -> (i32, i32) {
    %c0_i32 = arith.constant 0 : i32
    %c0_i32_0 = arith.constant 0 : i32
    %c0_i32_1 = arith.constant 0 : i32
    return %c0_i32, %c0_i32_0 : i32, i32
  }
  func.func @transform_5(%arg0: i32) -> (i32, i32) {
    %c0_i32 = arith.constant 0 : i32
    %c0_i32_0 = arith.constant 0 : i32
    %c0_i32_1 = arith.constant 0 : i32
    return %c0_i32, %c0_i32_0 : i32, i32
  }
  func.func @transform_6(%arg0: i32) -> (i32, i32) {
    %c0_i32 = arith.constant 0 : i32
    %c0_i32_0 = arith.constant 0 : i32
    %c0_i32_1 = arith.constant 0 : i32
    return %c0_i32, %c0_i32_0 : i32, i32
  }
  func.func @transform_7(%arg0: i32) -> (i32, i32) {
    %c0_i32 = arith.constant 0 : i32
    %c0_i32_0 = arith.constant 0 : i32
    return %arg0, %c0_i32 : i32, i32
  }
}

module attributes {stable_mosaic.version = 11 : i64} {
  func.func @_mlp_kernel(%arg0: i32, %arg1: memref<16x32xf32, #tpu.memory_space<vmem>>, %arg2: memref<32x128xbf16, #tpu.memory_space<vmem>>, %arg3: memref<1x128xf32, #tpu.memory_space<vmem>>, %arg4: memref<128x128xbf16, #tpu.memory_space<vmem>>, %arg5: memref<1x128xf32, #tpu.memory_space<vmem>>, %arg6: memref<128x16xbf16, #tpu.memory_space<vmem>>, %arg7: memref<1x16xf32, #tpu.memory_space<vmem>>, %arg8: memref<16x16xf32, #tpu.memory_space<vmem>>, %arg9: memref<16x128xbf16, #tpu.memory_space<vmem>>, %arg10: memref<16x128xbf16, #tpu.memory_space<vmem>>) attributes {dimension_semantics = [#tpu.dimension_semantics<parallel>], iteration_bounds = array<i64: 1>, scalar_prefetch = 0 : i64, scratch_operands = 2 : i64, tpu.core_type = #tpu.core_type<tc>, window_params = [{transform_indices = @transform_0, window_bounds = array<i64: 16, 32>}, {pipeline_mode = #tpu.pipeline_mode<synchronous>, transform_indices = @transform_1, window_bounds = array<i64: 32, 128>}, {pipeline_mode = #tpu.pipeline_mode<synchronous>, transform_indices = @transform_2, window_bounds = array<i64: 1, 128>}, {pipeline_mode = #tpu.pipeline_mode<synchronous>, transform_indices = @transform_3, window_bounds = array<i64: 128, 128>}, {pipeline_mode = #tpu.pipeline_mode<synchronous>, transform_indices = @transform_4, window_bounds = array<i64: 1, 128>}, {pipeline_mode = #tpu.pipeline_mode<synchronous>, transform_indices = @transform_5, window_bounds = array<i64: 128, 16>}, {pipeline_mode = #tpu.pipeline_mode<synchronous>, transform_indices = @transform_6, window_bounds = array<i64: 1, 16>}, {transform_indices = @transform_7, window_bounds = array<i64: 16, 16>}]} {
    %c0 = arith.constant 0 : index
    %c0_0 = arith.constant 0 : index
    %0 = vector.load %arg1[%c0, %c0_0] : memref<16x32xf32, #tpu.memory_space<vmem>>, vector<16x32xf32>
    %1 = arith.truncf %0 : vector<16x32xf32> to vector<16x32xbf16>
    %c0_1 = arith.constant 0 : index
    %c0_2 = arith.constant 0 : index
    %2 = vector.load %arg2[%c0_1, %c0_2] : memref<32x128xbf16, #tpu.memory_space<vmem>>, vector<32x128xbf16>
    %cst = arith.constant dense<0.000000e+00> : vector<16x128xf32>
    %3 = tpu.matmul %1, %2, %cst {dimension_numbers = #tpu.dot_dimension_numbers<[1], [0], [0], [1], [0, 0, 1, 1], [], []>} : vector<16x32xbf16>, vector<32x128xbf16>, vector<16x128xf32> -> vector<16x128xf32>
    %c0_3 = arith.constant 0 : index
    %c0_4 = arith.constant 0 : index
    %4 = vector.load %arg3[%c0_3, %c0_4] : memref<1x128xf32, #tpu.memory_space<vmem>>, vector<1x128xf32>
    %5 = vector.broadcast %4 : vector<1x128xf32> to vector<16x128xf32>
    %6 = arith.addf %3, %5 : vector<16x128xf32>
    %cst_5 = arith.constant 0.000000e+00 : f32
    %7 = vector.broadcast %cst_5 : f32 to vector<16x128xf32>
    %8 = arith.maximumf %6, %7 : vector<16x128xf32>
    %9 = arith.truncf %8 : vector<16x128xf32> to vector<16x128xbf16>
    %c0_6 = arith.constant 0 : index
    %c0_7 = arith.constant 0 : index
    %10 = vector.load %arg9[%c0_6, %c0_7] : memref<16x128xbf16, #tpu.memory_space<vmem>>, vector<16x128xbf16>
    tpu.vector_store %arg9[%c0_6, %c0_7], %9 {strides = array<i32>} : memref<16x128xbf16, #tpu.memory_space<vmem>>, vector<16x128xbf16>,
    %c0_8 = arith.constant 0 : index
    %c0_9 = arith.constant 0 : index
    %11 = vector.load %arg9[%c0_8, %c0_9] : memref<16x128xbf16, #tpu.memory_space<vmem>>, vector<16x128xbf16>
    %c0_10 = arith.constant 0 : index
    %c0_11 = arith.constant 0 : index
    %12 = vector.load %arg4[%c0_10, %c0_11] : memref<128x128xbf16, #tpu.memory_space<vmem>>, vector<128x128xbf16>
    %cst_12 = arith.constant dense<0.000000e+00> : vector<16x128xf32>
    %13 = tpu.matmul %11, %12, %cst_12 {dimension_numbers = #tpu.dot_dimension_numbers<[1], [0], [0], [1], [0, 0, 1, 1], [], []>} : vector<16x128xbf16>, vector<128x128xbf16>, vector<16x128xf32> -> vector<16x128xf32>
    %c0_13 = arith.constant 0 : index
    %c0_14 = arith.constant 0 : index
    %14 = vector.load %arg5[%c0_13, %c0_14] : memref<1x128xf32, #tpu.memory_space<vmem>>, vector<1x128xf32>
    %15 = vector.broadcast %14 : vector<1x128xf32> to vector<16x128xf32>
    %16 = arith.addf %13, %15 : vector<16x128xf32>
    %cst_15 = arith.constant 0.000000e+00 : f32
    %17 = vector.broadcast %cst_15 : f32 to vector<16x128xf32>
    %18 = arith.maximumf %16, %17 : vector<16x128xf32>
    %19 = arith.truncf %18 : vector<16x128xf32> to vector<16x128xbf16>
    %c0_16 = arith.constant 0 : index
    %c0_17 = arith.constant 0 : index
    %20 = vector.load %arg10[%c0_16, %c0_17] : memref<16x128xbf16, #tpu.memory_space<vmem>>, vector<16x128xbf16>
    tpu.vector_store %arg10[%c0_16, %c0_17], %19 {strides = array<i32>} : memref<16x128xbf16, #tpu.memory_space<vmem>>, vector<16x128xbf16>,
    %c0_18 = arith.constant 0 : index
    %c0_19 = arith.constant 0 : index
    %21 = vector.load %arg10[%c0_18, %c0_19] : memref<16x128xbf16, #tpu.memory_space<vmem>>, vector<16x128xbf16>
    %c0_20 = arith.constant 0 : index
    %c0_21 = arith.constant 0 : index
    %22 = vector.load %arg6[%c0_20, %c0_21] : memref<128x16xbf16, #tpu.memory_space<vmem>>, vector<128x16xbf16>
    %cst_22 = arith.constant dense<0.000000e+00> : vector<16x16xf32>
    %23 = tpu.matmul %21, %22, %cst_22 {dimension_numbers = #tpu.dot_dimension_numbers<[1], [0], [0], [1], [0, 0, 1, 1], [], []>} : vector<16x128xbf16>, vector<128x16xbf16>, vector<16x16xf32> -> vector<16x16xf32>
    %c0_23 = arith.constant 0 : index
    %c0_24 = arith.constant 0 : index
    %24 = vector.load %arg7[%c0_23, %c0_24] : memref<1x16xf32, #tpu.memory_space<vmem>>, vector<1x16xf32>
    %25 = vector.broadcast %24 : vector<1x16xf32> to vector<16x16xf32>
    %26 = arith.addf %23, %25 : vector<16x16xf32>
    %c0_25 = arith.constant 0 : index
    %c0_26 = arith.constant 0 : index
    %27 = vector.load %arg8[%c0_25, %c0_26] : memref<16x16xf32, #tpu.memory_space<vmem>>, vector<16x16xf32>
    tpu.vector_store %arg8[%c0_25, %c0_26], %26 {strides = array<i32>} : memref<16x16xf32, #tpu.memory_space<vmem>>, vector<16x16xf32>,
    return
  }
  func.func @transform_0(%arg0: i32) -> (i32, i32) {
    %c0_i32 = arith.constant 0 : i32
    %c0_i32_0 = arith.constant 0 : i32
    return %arg0, %c0_i32 : i32, i32
  }
  func.func @transform_1(%arg0: i32) -> (i32, i32) {
    %c0_i32 = arith.constant 0 : i32
    %c0_i32_0 = arith.constant 0 : i32
    %c0_i32_1 = arith.constant 0 : i32
    return %c0_i32, %c0_i32_0 : i32, i32
  }
  func.func @transform_2(%arg0: i32) -> (i32, i32) {
    %c0_i32 = arith.constant 0 : i32
    %c0_i32_0 = arith.constant 0 : i32
    %c0_i32_1 = arith.constant 0 : i32
    return %c0_i32, %c0_i32_0 : i32, i32
  }
  func.func @transform_3(%arg0: i32) -> (i32, i32) {
    %c0_i32 = arith.constant 0 : i32
    %c0_i32_0 = arith.constant 0 : i32
    %c0_i32_1 = arith.constant 0 : i32
    return %c0_i32, %c0_i32_0 : i32, i32
  }
  func.func @transform_4(%arg0: i32) -> (i32, i32) {
    %c0_i32 = arith.constant 0 : i32
    %c0_i32_0 = arith.constant 0 : i32
    %c0_i32_1 = arith.constant 0 : i32
    return %c0_i32, %c0_i32_0 : i32, i32
  }
  func.func @transform_5(%arg0: i32) -> (i32, i32) {
    %c0_i32 = arith.constant 0 : i32
    %c0_i32_0 = arith.constant 0 : i32
    %c0_i32_1 = arith.constant 0 : i32
    return %c0_i32, %c0_i32_0 : i32, i32
  }
  func.func @transform_6(%arg0: i32) -> (i32, i32) {
    %c0_i32 = arith.constant 0 : i32
    %c0_i32_0 = arith.constant 0 : i32
    %c0_i32_1 = arith.constant 0 : i32
    return %c0_i32, %c0_i32_0 : i32, i32
  }
  func.func @transform_7(%arg0: i32) -> (i32, i32) {
    %c0_i32 = arith.constant 0 : i32
    %c0_i32_0 = arith.constant 0 : i32
    return %arg0, %c0_i32 : i32, i32
  }
}

</mosaic_0001>

<bundles_post_ra>
// kernel: tpu_custom_call.1
= control target key start
LH: loop header
LB: loop body
LE: loop exit
PB: predicated region body
PF: predicated region fallthrough
CT: control target
= control target key end

     0   :  { %12 = vsyncpa [#allocation5], 0  ;;  %s691_s0 = inlined_call_operand.vmem [shape: f32[16,32], index: 0, kind: input, shape index: {}]   ;;  %s692_s1 = inlined_call_operand.hbm [shape: bf16[32,128], index: 1, kind: input, shape index: {}]   ;;  %s693_s2 = inlined_call_operand.vmem [shape: f32[1,128], index: 2, kind: input, shape index: {}]   ;;  %s694_s3 = inlined_call_operand.vmem [shape: bf16[128,128], index: 3, kind: input, shape index: {}]   ;;  %s695_s4 = inlined_call_operand.vmem [shape: f32[1,128], index: 4, kind: input, shape index: {}]   ;;  %s696_s5 = inlined_call_operand.vmem [shape: bf16[128,16], index: 5, kind: input, shape index: {}]   ;;  %s697_s6 = inlined_call_operand.vmem [shape: f32[1,16], index: 6, kind: input, shape index: {}]   ;;  %s698_s7 = inlined_call_operand.hbm [shape: f32[16,16], index: 7, kind: output, shape index: {}]  }
   0x1   :  { %13 = vsyncpa [#allocation6], 0  ;;  %s532_s24 = smov [#allocation4]   ;;  %s484_s28 = scalar_lea.hbm %s692_s1, 256 }
   0x2   :  { %s21_s25 = sshll.u32 %s532_s24, 4  ;;  %p485_p0 = scmp.ne.s32.totalorder %s692_s1, %s484_s28  ;;  %s22_s25 = int_to_ptr.vmem [resolvable:$true] %s21_s25 }
   0x3   :  { %p488_p1 = scmp.lt.u32.totalorder %s484_s28, %s692_s1 }
   0x5   :  { %p490_p2 = pnand %p488_p1, %p485_p0 }
   0x7   :  { %493 = shalt.err (!%p490_p2)
}
   0x8   :  { %s494_s10 = scalar_lea.vmem %s22_s25, 256  ;;  %p499_p4 = scmp.lt.s32.totalorder %s22_s25, %s22_s25 }
   0x9   :  { %p495_p3 = scmp.ne.s32.totalorder %s22_s25, %s494_s10  ;;  %p500_p5 = scmp.lt.s32.totalorder %s494_s10, %s494_s10 }
   0xb   :  { %p501_p6 = por %p500_p5, %p499_p4 }
   0xd   :  { %p502_p7 = pnand %p501_p6, %p495_p3 }
   0xf   :  { %505 = shalt.err (!%p502_p7)
}
  0x10   :  { %s533_s11 = smov 64   ;;  %s534_s12 = smov 4  }
  0x11   :  { %27 = dma.hbm_to_vmem [thread:$0]  %s692_s1, 256, %s22_s25, [#allocation5], %s533_s11, %s533_s11, %s534_s12  }
  0x12   :  { %528 = dma.done.wait [#allocation5], 256  }
  0x13   :  { %529 = vsyncadd [#allocation5], 4294967040  ;;  %v535_v0 = vmov 0.0   ;;  %vm536_vm0 = vmmov 0   ;;  %v466_v1 = vld [vmem:[#allocation4] sm:$0xff]   ;;  %v467_v2 = vld [vmem:[#allocation4 + $0x8] sm:$0xff]  }
  0x14   :  { %410 = vmatprep.subr.bf16.mxu0 %v535_v0  ;;  %414 = vmatprep.mubr.msk.bf16.mxu0 %vm536_vm0, %v535_v0  ;;  %v42_v3 = vld [vmem:[%s691_s0] sm:$0xff]  ;;  %v43_v4 = vld [vmem:[%s691_s0 + $0x8] sm:$0xff]  ;;  %vm68_vm1 = vcmask 261120   ;;  %v470_v8 = vld [vmem:[%s694_s3 + $0x10] sm:$0xff]   ;;  %vm347_vm2 = vcmask 130048  }
  0x15   :  { %418 = vmatprep.subr.bf16.mxu1 %v535_v0  ;;  %434 = vmatprep.mubr.msk.bf16.mxu1 %vm536_vm0, %v535_v0  ;;  %v468_v5 = vld [vmem:[%s694_s3] sm:$0xff]   ;;  %v44_v6 = vpack.c.bf16 %v43_v4, %v42_v3  ;;  %v469_v7 = vld [vmem:[%s694_s3 + $0x8] sm:$0xff]   ;;  %v471_v9 = vld [vmem:[%s694_s3 + $0x18] sm:$0xff]  }
  0x16   :  { %411 = vmatpush3.bf16.msra.mxu0 %v466_v1  ;;  %419 = vmatpush3.bf16.msra.mxu1 %v468_v5  ;;  %v472_v10 = vld [vmem:[%s694_s3 + $0x20] sm:$0xff]   ;;  %v473_v11 = vld [vmem:[%s694_s3 + $0x28] sm:$0xff]   ;;  %v474_v12 = vld [vmem:[%s694_s3 + $0x30] sm:$0xff]  }
  0x17   :  { %412 = vmatprep.subr.bf16.mxu0 %v535_v0  ;;  %420 = vmatprep.subr.bf16.mxu1 %v535_v0  ;;  %v475_v13 = vld [vmem:[%s694_s3 + $0x38] sm:$0xff]   ;;  %v476_v14 = vld [vmem:[%s696_s5] sm:$0xff]   ;;  %v477_v15 = vld [vmem:[%s696_s5 + $0x8] sm:$0xff]  }
  0x18   :  { %v478_v16 = vld [vmem:[%s696_s5 + $0x10] sm:$0xff]   ;;  %v479_v17 = vld [vmem:[%s696_s5 + $0x18] sm:$0xff]   ;;  %v480_v18 = vld [vmem:[%s696_s5 + $0x20] sm:$0xff]  }
  0x19   :  { %v481_v19 = vld [vmem:[%s696_s5 + $0x28] sm:$0xff]   ;;  %v367_v20 = vld [vmem:[%s693_s2] ss:$0 sm:$0xff]  ;;  %v482_v30 = vld [vmem:[%s696_s5 + $0x30] sm:$0xff]  }
  0x1a   :  { %413 = vmatpush3.bf16.msra.mxu0 %v467_v2  ;;  %421 = vmatpush3.bf16.msra.mxu1 %v469_v7  ;;  %v483_v31 = vld [vmem:[%s696_s5 + $0x38] sm:$0xff]   ;;  %v371_v32 = vld [vmem:[%s695_s4] ss:$0 sm:$0xff]  ;;  %s537_s5 = smov [#allocation7]  }
  0x1b   :  { %438 = vmatprep.subr.bf16.mxu0 %v535_v0  ;;  %422 = vmatprep.subr.bf16.mxu1 %v535_v0  ;;  %v380_v42 = vld [vmem:[%s697_s6] ss:$0 sm:$0xff]  ;;  %s355_s28 = sshll.u32 %s537_s5, 4  ;;  %s356_s28 = int_to_ptr.vmem [resolvable:$true] %s355_s28 }
  0x1c   :  { %s506_s4 = scalar_lea.vmem %s356_s28, 256  ;;  %p511_p9 = scmp.lt.s32.totalorder %s356_s28, %s356_s28 }
  0x1d   :  { %415 = vmatmul.mubr.msk.bf16.vlgmr.msra.gmra.mrb[0].mxu0 %vm68_vm1, %v44_v6  ;;  %p507_p8 = scmp.ne.s32.totalorder %s356_s28, %s506_s4  ;;  %p512_p10 = scmp.lt.s32.totalorder %s506_s4, %s506_s4 }
  0x1e   :  { %454 = vmatprep.mubr.msk.bf16.mxu0 %vm536_vm0, %v535_v0  ;;  %423 = vmatpush3.bf16.msra.mxu1 %v470_v8 }
  0x1f   :  { %424 = vmatprep.subr.bf16.mxu1 %v535_v0  ;;  %439 = vmatpush3.bf16.msra.mxu0 %v476_v14  ;;  %p513_p11 = por %p512_p10, %p511_p9 }
  0x20   :  { %440 = vmatprep.subr.bf16.mxu0 %v535_v0 }
  0x21   :  { %p514_p12 = pnand %p513_p11, %p507_p8 }
  0x22   :  { %425 = vmatpush3.bf16.msra.mxu1 %v471_v9 }
  0x23   :  { %426 = vmatprep.subr.bf16.mxu1 %v535_v0  ;;  %441 = vmatpush3.bf16.msra.mxu0 %v477_v15 }
  0x24   :  { %442 = vmatprep.subr.bf16.mxu0 %v535_v0 }
  0x26   :  { %427 = vmatpush3.bf16.msra.mxu1 %v472_v10 }
  0x27   :  { %428 = vmatprep.subr.bf16.mxu1 %v535_v0  ;;  %443 = vmatpush3.bf16.msra.mxu0 %v478_v16 }
  0x28   :  { %444 = vmatprep.subr.bf16.mxu0 %v535_v0 }
  0x2a   :  { %429 = vmatpush3.bf16.msra.mxu1 %v473_v11 }
  0x2b   :  { %430 = vmatprep.subr.bf16.mxu1 %v535_v0  ;;  %445 = vmatpush3.bf16.msra.mxu0 %v479_v17 }
  0x2c   :  { %446 = vmatprep.subr.bf16.mxu0 %v535_v0 }
  0x2e   :  { %431 = vmatpush3.bf16.msra.mxu1 %v474_v12 }
  0x2f   :  { %432 = vmatprep.subr.bf16.mxu1 %v535_v0  ;;  %447 = vmatpush3.bf16.msra.mxu0 %v480_v18 }
  0x30   :  { %448 = vmatprep.subr.bf16.mxu0 %v535_v0 }
  0x32   :  { %433 = vmatpush3.bf16.msra.mxu1 %v475_v13 }
  0x33   :  { %449 = vmatpush3.bf16.msra.mxu0 %v481_v19 }
  0x34   :  { %450 = vmatprep.subr.bf16.mxu0 %v535_v0 }
  0x37   :  { %451 = vmatpush3.bf16.msra.mxu0 %v482_v30 }
  0x38   :  { %452 = vmatprep.subr.bf16.mxu0 %v535_v0 }
  0x3b   :  { %453 = vmatpush3.bf16.msra.mxu0 %v483_v31 }
  0xf0   :  { %v106_v21 = vpop.f32.mrb[0].mxu0 }
  0xf1   :  { %v107_v22 = vadd.f32 %v367_v20, %v106_v21  ;;  %v416_v23 = vpop.f32.mrb[1].mxu0 }
  0xf2   :  { %v109_v24 = vpop.f32.mrb[2].mxu0 }
  0xf3   :  { %v110_v25 = vadd.f32 %v367_v20, %v109_v24  ;;  %v417_v26 = vpop.f32.mrb[3].mxu0  ;;  %v113_v27 = vmax.f32 %v107_v22, 0.0 }
  0xf5   :  { %v114_v28 = vmax.f32 %v110_v25, 0.0 }
  0xf7   :  { %v115_v29 = vpack.c.bf16 %v114_v28, %v113_v27 }
  0xf9   :  { %435 = vmatmul.mubr.bf16.vlgmr.msra.gmra.mrb[0].mxu1 %v115_v29 }
 0x1cc   :  { %v223_v33 = vpop.f32.mrb[0].mxu1 }
 0x1cd   :  { %v224_v34 = vadd.f32 %v371_v32, %v223_v33  ;;  %v436_v35 = vpop.f32.mrb[1].mxu1 }
 0x1ce   :  { %v226_v36 = vpop.f32.mrb[2].mxu1 }
 0x1cf   :  { %v227_v37 = vadd.f32 %v371_v32, %v226_v36  ;;  %v437_v38 = vpop.f32.mrb[3].mxu1  ;;  %v230_v39 = vmax.f32 %v224_v34, 0.0 }
 0x1d1   :  { %v231_v40 = vmax.f32 %v227_v37, 0.0 }
 0x1d3   :  { %v232_v41 = vpack.c.bf16 %v231_v40, %v230_v39 }
 0x1d5   :  { %455 = vmatmul.mubr.bf16.vlgmr.msra.gmra.mrb[4].mxu0 %v232_v41 }
 0x2a8   :  { %v340_v43 = vpop.f32.mrb[4].mxu0 }
 0x2a9   :  { %v341_v44 = vadd.f32 %v380_v42, %v340_v43  ;;  %v456_v45 = vpop.f32.mrb[5].mxu0 }
 0x2aa   :  { %v343_v46 = vpop.f32.mrb[6].mxu0 }
 0x2ab   :  { %348 = vst.msk [vmem:[#allocation7] sm:$0xff] %vm347_vm2, %v341_v44  ;;  %v344_v47 = vadd.f32 %v380_v42, %v343_v46  ;;  %v457_v48 = vpop.f32.mrb[7].mxu0 }
 0x2ad   :  { %349 = vst.msk [vmem:[#allocation7 + $0x8] sm:$0xff] %vm347_vm2, %v344_v47 }
 0x2ae   :  { %517 = shalt.err (!%p514_p12)
}
 0x2af   :  { %s518_s30 = scalar_lea.hbm %s698_s7, 256 }
 0x2b0   :  { %p519_p13 = scmp.ne.s32.totalorder %s698_s7, %s518_s30  ;;  %p522_p0 = scmp.lt.u32.totalorder %s518_s30, %s698_s7 }
 0x2b2   :  { %p524_p1 = pnand %p522_p0, %p519_p13 }
 0x2b4   :  { %527 = shalt.err (!%p524_p1)
}
 0x2b5   :  { %s538_s12 = smov 128   ;;  %s539_s13 = smov 8  }
 0x2b6   :  { %361 = dma.vmem_to_hbm [thread:$0]  %s356_s28, 256, %s698_s7, [#allocation6], %s538_s12, %s538_s12, %s539_s13  }
 0x2b7   :  { %530 = dma.done.wait [#allocation6], 256  }
 0x2b8   :  { %531 = vsyncadd [#allocation6], 4294967040 }
 0x2b9   :  { %365 = vsyncpa [#allocation5], 1 }
 0x2ba   :  { %366 = vsyncpa [#allocation6], 1 }

// kernel: tpu_custom_call.1
= control target key start
LH: loop header
LB: loop body
LE: loop exit
PB: predicated region body
PF: predicated region fallthrough
CT: control target
= control target key end

     0   :  { %12 = vsyncpa [#allocation5], 0  ;;  %s691_s0 = inlined_call_operand.vmem [shape: f32[16,32], index: 0, kind: input, shape index: {}]   ;;  %s692_s1 = inlined_call_operand.hbm [shape: bf16[32,128], index: 1, kind: input, shape index: {}]   ;;  %s693_s2 = inlined_call_operand.vmem [shape: f32[1,128], index: 2, kind: input, shape index: {}]   ;;  %s694_s3 = inlined_call_operand.vmem [shape: bf16[128,128], index: 3, kind: input, shape index: {}]   ;;  %s695_s4 = inlined_call_operand.vmem [shape: f32[1,128], index: 4, kind: input, shape index: {}]   ;;  %s696_s5 = inlined_call_operand.vmem [shape: bf16[128,16], index: 5, kind: input, shape index: {}]   ;;  %s697_s6 = inlined_call_operand.vmem [shape: f32[1,16], index: 6, kind: input, shape index: {}]   ;;  %s698_s7 = inlined_call_operand.hbm [shape: f32[16,16], index: 7, kind: output, shape index: {}]  }
   0x1   :  { %13 = vsyncpa [#allocation6], 0  ;;  %s532_s24 = smov [#allocation4]   ;;  %s484_s28 = scalar_lea.hbm %s692_s1, 256 }
   0x2   :  { %s21_s25 = sshll.u32 %s532_s24, 4  ;;  %p485_p0 = scmp.ne.s32.totalorder %s692_s1, %s484_s28  ;;  %s22_s25 = int_to_ptr.vmem [resolvable:$true] %s21_s25 }
   0x3   :  { %p488_p1 = scmp.lt.u32.totalorder %s484_s28, %s692_s1 }
   0x5   :  { %p490_p2 = pnand %p488_p1, %p485_p0 }
   0x7   :  { %493 = shalt.err (!%p490_p2)
}
   0x8   :  { %s494_s10 = scalar_lea.vmem %s22_s25, 256  ;;  %p499_p4 = scmp.lt.s32.totalorder %s22_s25, %s22_s25 }
   0x9   :  { %p495_p3 = scmp.ne.s32.totalorder %s22_s25, %s494_s10  ;;  %p500_p5 = scmp.lt.s32.totalorder %s494_s10, %s494_s10 }
   0xb   :  { %p501_p6 = por %p500_p5, %p499_p4 }
   0xd   :  { %p502_p7 = pnand %p501_p6, %p495_p3 }
   0xf   :  { %505 = shalt.err (!%p502_p7)
}
  0x10   :  { %s533_s11 = smov 64   ;;  %s534_s12 = smov 4  }
  0x11   :  { %27 = dma.hbm_to_vmem [thread:$0]  %s692_s1, 256, %s22_s25, [#allocation5], %s533_s11, %s533_s11, %s534_s12  }
  0x12   :  { %528 = dma.done.wait [#allocation5], 256  }
  0x13   :  { %529 = vsyncadd [#allocation5], 4294967040  ;;  %v535_v0 = vmov 0.0   ;;  %vm536_vm0 = vmmov 0   ;;  %v466_v1 = vld [vmem:[#allocation4] sm:$0xff]   ;;  %v467_v2 = vld [vmem:[#allocation4 + $0x8] sm:$0xff]  }
  0x14   :  { %410 = vmatprep.subr.bf16.mxu0 %v535_v0  ;;  %414 = vmatprep.mubr.msk.bf16.mxu0 %vm536_vm0, %v535_v0  ;;  %v42_v3 = vld [vmem:[%s691_s0] sm:$0xff]  ;;  %v43_v4 = vld [vmem:[%s691_s0 + $0x8] sm:$0xff]  ;;  %vm68_vm1 = vcmask 261120   ;;  %v470_v8 = vld [vmem:[%s694_s3 + $0x10] sm:$0xff]   ;;  %vm347_vm2 = vcmask 130048  }
  0x15   :  { %418 = vmatprep.subr.bf16.mxu1 %v535_v0  ;;  %434 = vmatprep.mubr.msk.bf16.mxu1 %vm536_vm0, %v535_v0  ;;  %v468_v5 = vld [vmem:[%s694_s3] sm:$0xff]   ;;  %v44_v6 = vpack.c.bf16 %v43_v4, %v42_v3  ;;  %v469_v7 = vld [vmem:[%s694_s3 + $0x8] sm:$0xff]   ;;  %v471_v9 = vld [vmem:[%s694_s3 + $0x18] sm:$0xff]  }
  0x16   :  { %411 = vmatpush3.bf16.msra.mxu0 %v466_v1  ;;  %419 = vmatpush3.bf16.msra.mxu1 %v468_v5  ;;  %v472_v10 = vld [vmem:[%s694_s3 + $0x20] sm:$0xff]   ;;  %v473_v11 = vld [vmem:[%s694_s3 + $0x28] sm:$0xff]   ;;  %v474_v12 = vld [vmem:[%s694_s3 + $0x30] sm:$0xff]  }
  0x17   :  { %412 = vmatprep.subr.bf16.mxu0 %v535_v0  ;;  %420 = vmatprep.subr.bf16.mxu1 %v535_v0  ;;  %v475_v13 = vld [vmem:[%s694_s3 + $0x38] sm:$0xff]   ;;  %v476_v14 = vld [vmem:[%s696_s5] sm:$0xff]   ;;  %v477_v15 = vld [vmem:[%s696_s5 + $0x8] sm:$0xff]  }
  0x18   :  { %v478_v16 = vld [vmem:[%s696_s5 + $0x10] sm:$0xff]   ;;  %v479_v17 = vld [vmem:[%s696_s5 + $0x18] sm:$0xff]   ;;  %v480_v18 = vld [vmem:[%s696_s5 + $0x20] sm:$0xff]  }
  0x19   :  { %v481_v19 = vld [vmem:[%s696_s5 + $0x28] sm:$0xff]   ;;  %v367_v20 = vld [vmem:[%s693_s2] ss:$0 sm:$0xff]  ;;  %v482_v30 = vld [vmem:[%s696_s5 + $0x30] sm:$0xff]  }
  0x1a   :  { %413 = vmatpush3.bf16.msra.mxu0 %v467_v2  ;;  %421 = vmatpush3.bf16.msra.mxu1 %v469_v7  ;;  %v483_v31 = vld [vmem:[%s696_s5 + $0x38] sm:$0xff]   ;;  %v371_v32 = vld [vmem:[%s695_s4] ss:$0 sm:$0xff]  ;;  %s537_s5 = smov [#allocation7]  }
  0x1b   :  { %438 = vmatprep.subr.bf16.mxu0 %v535_v0  ;;  %422 = vmatprep.subr.bf16.mxu1 %v535_v0  ;;  %v380_v42 = vld [vmem:[%s697_s6] ss:$0 sm:$0xff]  ;;  %s355_s28 = sshll.u32 %s537_s5, 4  ;;  %s356_s28 = int_to_ptr.vmem [resolvable:$true] %s355_s28 }
  0x1c   :  { %s506_s4 = scalar_lea.vmem %s356_s28, 256  ;;  %p511_p9 = scmp.lt.s32.totalorder %s356_s28, %s356_s28 }
  0x1d   :  { %415 = vmatmul.mubr.msk.bf16.vlgmr.msra.gmra.mrb[0].mxu0 %vm68_vm1, %v44_v6  ;;  %p507_p8 = scmp.ne.s32.totalorder %s356_s28, %s506_s4  ;;  %p512_p10 = scmp.lt.s32.totalorder %s506_s4, %s506_s4 }
  0x1e   :  { %454 = vmatprep.mubr.msk.bf16.mxu0 %vm536_vm0, %v535_v0  ;;  %423 = vmatpush3.bf16.msra.mxu1 %v470_v8 }
  0x1f   :  { %424 = vmatprep.subr.bf16.mxu1 %v535_v0  ;;  %439 = vmatpush3.bf16.msra.mxu0 %v476_v14  ;;  %p513_p11 = por %p512_p10, %p511_p9 }
  0x20   :  { %440 = vmatprep.subr.bf16.mxu0 %v535_v0 }
  0x21   :  { %p514_p12 = pnand %p513_p11, %p507_p8 }
  0x22   :  { %425 = vmatpush3.bf16.msra.mxu1 %v471_v9 }
  0x23   :  { %426 = vmatprep.subr.bf16.mxu1 %v535_v0  ;;  %441 = vmatpush3.bf16.msra.mxu0 %v477_v15 }
  0x24   :  { %442 = vmatprep.subr.bf16.mxu0 %v535_v0 }
  0x26   :  { %427 = vmatpush3.bf16.msra.mxu1 %v472_v10 }
  0x27   :  { %428 = vmatprep.subr.bf16.mxu1 %v535_v0  ;;  %443 = vmatpush3.bf16.msra.mxu0 %v478_v16 }
  0x28   :  { %444 = vmatprep.subr.bf16.mxu0 %v535_v0 }
  0x2a   :  { %429 = vmatpush3.bf16.msra.mxu1 %v473_v11 }
  0x2b   :  { %430 = vmatprep.subr.bf16.mxu1 %v535_v0  ;;  %445 = vmatpush3.bf16.msra.mxu0 %v479_v17 }
  0x2c   :  { %446 = vmatprep.subr.bf16.mxu0 %v535_v0 }
  0x2e   :  { %431 = vmatpush3.bf16.msra.mxu1 %v474_v12 }
  0x2f   :  { %432 = vmatprep.subr.bf16.mxu1 %v535_v0  ;;  %447 = vmatpush3.bf16.msra.mxu0 %v480_v18 }
  0x30   :  { %448 = vmatprep.subr.bf16.mxu0 %v535_v0 }
  0x32   :  { %433 = vmatpush3.bf16.msra.mxu1 %v475_v13 }
  0x33   :  { %449 = vmatpush3.bf16.msra.mxu0 %v481_v19 }
  0x34   :  { %450 = vmatprep.subr.bf16.mxu0 %v535_v0 }
  0x37   :  { %451 = vmatpush3.bf16.msra.mxu0 %v482_v30 }
  0x38   :  { %452 = vmatprep.subr.bf16.mxu0 %v535_v0 }
  0x3b   :  { %453 = vmatpush3.bf16.msra.mxu0 %v483_v31 }
  0xf0   :  { %v106_v21 = vpop.f32.mrb[0].mxu0 }
  0xf1   :  { %v107_v22 = vadd.f32 %v367_v20, %v106_v21  ;;  %v416_v23 = vpop.f32.mrb[1].mxu0 }
  0xf2   :  { %v109_v24 = vpop.f32.mrb[2].mxu0 }
  0xf3   :  { %v110_v25 = vadd.f32 %v367_v20, %v109_v24  ;;  %v417_v26 = vpop.f32.mrb[3].mxu0  ;;  %v113_v27 = vmax.f32 %v107_v22, 0.0 }
  0xf5   :  { %v114_v28 = vmax.f32 %v110_v25, 0.0 }
  0xf7   :  { %v115_v29 = vpack.c.bf16 %v114_v28, %v113_v27 }
  0xf9   :  { %435 = vmatmul.mubr.bf16.vlgmr.msra.gmra.mrb[0].mxu1 %v115_v29 }
 0x1cc   :  { %v223_v33 = vpop.f32.mrb[0].mxu1 }
 0x1cd   :  { %v224_v34 = vadd.f32 %v371_v32, %v223_v33  ;;  %v436_v35 = vpop.f32.mrb[1].mxu1 }
 0x1ce   :  { %v226_v36 = vpop.f32.mrb[2].mxu1 }
 0x1cf   :  { %v227_v37 = vadd.f32 %v371_v32, %v226_v36  ;;  %v437_v38 = vpop.f32.mrb[3].mxu1  ;;  %v230_v39 = vmax.f32 %v224_v34, 0.0 }
 0x1d1   :  { %v231_v40 = vmax.f32 %v227_v37, 0.0 }
 0x1d3   :  { %v232_v41 = vpack.c.bf16 %v231_v40, %v230_v39 }
 0x1d5   :  { %455 = vmatmul.mubr.bf16.vlgmr.msra.gmra.mrb[4].mxu0 %v232_v41 }
 0x2a8   :  { %v340_v43 = vpop.f32.mrb[4].mxu0 }
 0x2a9   :  { %v341_v44 = vadd.f32 %v380_v42, %v340_v43  ;;  %v456_v45 = vpop.f32.mrb[5].mxu0 }
 0x2aa   :  { %v343_v46 = vpop.f32.mrb[6].mxu0 }
 0x2ab   :  { %348 = vst.msk [vmem:[#allocation7] sm:$0xff] %vm347_vm2, %v341_v44  ;;  %v344_v47 = vadd.f32 %v380_v42, %v343_v46  ;;  %v457_v48 = vpop.f32.mrb[7].mxu0 }
 0x2ad   :  { %349 = vst.msk [vmem:[#allocation7 + $0x8] sm:$0xff] %vm347_vm2, %v344_v47 }
 0x2ae   :  { %517 = shalt.err (!%p514_p12)
}
 0x2af   :  { %s518_s30 = scalar_lea.hbm %s698_s7, 256 }
 0x2b0   :  { %p519_p13 = scmp.ne.s32.totalorder %s698_s7, %s518_s30  ;;  %p522_p0 = scmp.lt.u32.totalorder %s518_s30, %s698_s7 }
 0x2b2   :  { %p524_p1 = pnand %p522_p0, %p519_p13 }
 0x2b4   :  { %527 = shalt.err (!%p524_p1)
}
 0x2b5   :  { %s538_s12 = smov 128   ;;  %s539_s13 = smov 8  }
 0x2b6   :  { %361 = dma.vmem_to_hbm [thread:$0]  %s356_s28, 256, %s698_s7, [#allocation6], %s538_s12, %s538_s12, %s539_s13  }
 0x2b7   :  { %530 = dma.done.wait [#allocation6], 256  }
 0x2b8   :  { %531 = vsyncadd [#allocation6], 4294967040 }
 0x2b9   :  { %365 = vsyncpa [#allocation5], 1 }
 0x2ba   :  { %366 = vsyncpa [#allocation6], 1 }

</bundles_post_ra>
